<compile_context>
chip_gen: v6e
topology: v6e:2x2x1
jax: 0.10.0
libtpu: 0.0.40
codegen_flags: <defaults>
</compile_context>

<pallas_src>
import jax
import jax.numpy as jnp
from jax.experimental import pallas as pl
from jax.experimental.pallas import tpu as pltpu


def _noopt_kernel(x_ref, wt_ref, b_ref, h_ref, out_ref):
    # x_ref:  (B, IN)    activations
    # wt_ref: (IN, OUT)  weight, already transposed in the wrapper
    # b_ref:  (1, OUT)   bias
    # h_ref:  (B, OUT)   hidden state
    x = x_ref[...]
    wt = wt_ref[...]
    b = b_ref[...]
    h = h_ref[...]

    in_feat = x_ref.shape[1]  # static (== 4)

    # y = x @ W^T + b + h  computed as 4 unrolled VPU FMAs (no MXU, no MRF pop):
    #   y += x[:, k:k+1] * W^T[k, :]
    y = h + b
    for k in range(in_feat):
        y = y + x[:, k:k + 1] * wt[k:k + 1, :]

    out_ref[...] = jnp.tanh(y).astype(out_ref.dtype)


def noopt_forward(x, h, weight, bias):
    """new_h = tanh(x @ W^T + b + h); returns (new_h, new_h).

    `weight` is PyTorch-layout (out_features, in_features); it is transposed
    once here (static parameter, free) so the kernel body needs no relayout.
    """
    B = x.shape[0]
    out_feat = weight.shape[0]

    wt = weight.T                       # (IN, OUT), done once outside the kernel
    bias2d = bias.reshape(1, out_feat)  # (1, OUT)

    vmem = pltpu.MemorySpace.VMEM
    new_h = pl.pallas_call(
        _noopt_kernel,
        out_shape=jax.ShapeDtypeStruct((B, out_feat), x.dtype),
        in_specs=[
            pl.BlockSpec(memory_space=vmem),  # x
            pl.BlockSpec(memory_space=vmem),  # W^T
            pl.BlockSpec(memory_space=vmem),  # bias
            pl.BlockSpec(memory_space=vmem),  # h
        ],
        out_specs=pl.BlockSpec(memory_space=vmem),
    )(x, wt, bias2d, h)

    return (new_h, new_h)


noopt_forward_jit = jax.jit(noopt_forward)


if __name__ == "__main__":
    key = jax.random.PRNGKey(0)
    k_x, k_h, k_w, k_b = jax.random.split(key, 4)

    B, FEAT = 8, 4  # nn.Linear(4, 4) -> feature dim is 4

    x = jax.random.normal(k_x, (B, FEAT), dtype=jnp.float32)
    h = jax.random.normal(k_h, (B, FEAT), dtype=jnp.float32)

    # Deterministic parameters (PyTorch nn.Linear shapes: W (4,4), b (4,))
    bound = 1.0 / jnp.sqrt(FEAT)
    weight = jax.random.uniform(k_w, (FEAT, FEAT), jnp.float32, -bound, bound)
    bias = jax.random.uniform(k_b, (FEAT,), jnp.float32, -bound, bound)

    new_h, new_h2 = noopt_forward_jit(x, h, weight, bias)
    jax.block_until_ready((new_h, new_h2))

    # Reference check in plain JAX
    ref = jnp.tanh(x @ weight.T + bias + h)
    assert jnp.allclose(new_h, ref, atol=1e-5, rtol=1e-5)
    assert jnp.allclose(new_h2, ref, atol=1e-5, rtol=1e-5)

    print("KERNEL_OK")
</pallas_src>

<mosaic_0001>
module attributes {stable_mosaic.version = 11 : i64} {
  func.func @_noopt_kernel(%arg0: memref<8x4xf32, #tpu.memory_space<vmem>>, %arg1: memref<4x4xf32, #tpu.memory_space<vmem>>, %arg2: memref<1x4xf32, #tpu.memory_space<vmem>>, %arg3: memref<8x4xf32, #tpu.memory_space<vmem>>, %arg4: memref<8x4xf32, #tpu.memory_space<vmem>>) attributes {dimension_semantics = [], scalar_prefetch = 0 : i64, scratch_operands = 0 : i64, tpu.core_type = #tpu.core_type<tc>} {
    %c0 = arith.constant 0 : index
    %c0_0 = arith.constant 0 : index
    %0 = vector.load %arg0[%c0, %c0_0] : memref<8x4xf32, #tpu.memory_space<vmem>>, vector<8x4xf32>
    %c0_1 = arith.constant 0 : index
    %c0_2 = arith.constant 0 : index
    %1 = vector.load %arg1[%c0_1, %c0_2] : memref<4x4xf32, #tpu.memory_space<vmem>>, vector<4x4xf32>
    %c0_3 = arith.constant 0 : index
    %c0_4 = arith.constant 0 : index
    %2 = vector.load %arg2[%c0_3, %c0_4] : memref<1x4xf32, #tpu.memory_space<vmem>>, vector<1x4xf32>
    %c0_5 = arith.constant 0 : index
    %c0_6 = arith.constant 0 : index
    %3 = vector.load %arg3[%c0_5, %c0_6] : memref<8x4xf32, #tpu.memory_space<vmem>>, vector<8x4xf32>
    %4 = vector.broadcast %2 : vector<1x4xf32> to vector<8x4xf32>
    %5 = arith.addf %3, %4 : vector<8x4xf32>
    %6 = vector.extract_strided_slice %0 {offsets = [0, 0], sizes = [8, 1], strides = [1, 1]} : vector<8x4xf32> to vector<8x1xf32>
    %7 = vector.extract_strided_slice %1 {offsets = [0, 0], sizes = [1, 4], strides = [1, 1]} : vector<4x4xf32> to vector<1x4xf32>
    %8 = vector.broadcast %6 : vector<8x1xf32> to vector<8x4xf32>
    %9 = vector.broadcast %7 : vector<1x4xf32> to vector<8x4xf32>
    %10 = arith.mulf %8, %9 : vector<8x4xf32>
    %11 = arith.addf %5, %10 : vector<8x4xf32>
    %12 = vector.extract_strided_slice %0 {offsets = [0, 1], sizes = [8, 1], strides = [1, 1]} : vector<8x4xf32> to vector<8x1xf32>
    %13 = vector.extract_strided_slice %1 {offsets = [1, 0], sizes = [1, 4], strides = [1, 1]} : vector<4x4xf32> to vector<1x4xf32>
    %14 = vector.broadcast %12 : vector<8x1xf32> to vector<8x4xf32>
    %15 = vector.broadcast %13 : vector<1x4xf32> to vector<8x4xf32>
    %16 = arith.mulf %14, %15 : vector<8x4xf32>
    %17 = arith.addf %11, %16 : vector<8x4xf32>
    %18 = vector.extract_strided_slice %0 {offsets = [0, 2], sizes = [8, 1], strides = [1, 1]} : vector<8x4xf32> to vector<8x1xf32>
    %19 = vector.extract_strided_slice %1 {offsets = [2, 0], sizes = [1, 4], strides = [1, 1]} : vector<4x4xf32> to vector<1x4xf32>
    %20 = vector.broadcast %18 : vector<8x1xf32> to vector<8x4xf32>
    %21 = vector.broadcast %19 : vector<1x4xf32> to vector<8x4xf32>
    %22 = arith.mulf %20, %21 : vector<8x4xf32>
    %23 = arith.addf %17, %22 : vector<8x4xf32>
    %24 = vector.extract_strided_slice %0 {offsets = [0, 3], sizes = [8, 1], strides = [1, 1]} : vector<8x4xf32> to vector<8x1xf32>
    %25 = vector.extract_strided_slice %1 {offsets = [3, 0], sizes = [1, 4], strides = [1, 1]} : vector<4x4xf32> to vector<1x4xf32>
    %26 = vector.broadcast %24 : vector<8x1xf32> to vector<8x4xf32>
    %27 = vector.broadcast %25 : vector<1x4xf32> to vector<8x4xf32>
    %28 = arith.mulf %26, %27 : vector<8x4xf32>
    %29 = arith.addf %23, %28 : vector<8x4xf32>
    %30 = math.tanh %29 : vector<8x4xf32>
    %c0_7 = arith.constant 0 : index
    %c0_8 = arith.constant 0 : index
    %31 = vector.load %arg4[%c0_7, %c0_8] : memref<8x4xf32, #tpu.memory_space<vmem>>, vector<8x4xf32>
    tpu.vector_store %arg4[%c0_7, %c0_8], %30 {strides = array<i32>} : memref<8x4xf32, #tpu.memory_space<vmem>>, vector<8x4xf32>,
    return
  }
}

</mosaic_0001>

<bundles_post_ra>
// kernel: noopt_forward.1
= control target key start
LH: loop header
LB: loop body
LE: loop exit
PB: predicated region body
PF: predicated region fallthrough
CT: control target
= control target key end

     0   :  { %v88_v0 = vmov 0   ;;  %v89_v2 = vmov 2   ;;  %v90_v3 = vmov 1   ;;  %v91_v4 = vmov 3   ;;  %s132_s0 = inlined_call_operand.vmem [shape: f32[8,4], index: 0, kind: input, shape index: {}]   ;;  %s133_s1 = inlined_call_operand.vmem [shape: f32[4,4], index: 1, kind: input, shape index: {}]   ;;  %s134_s2 = inlined_call_operand.vmem [shape: f32[1,4], index: 2, kind: input, shape index: {}]   ;;  %s135_s3 = inlined_call_operand.vmem [shape: f32[8,4], index: 3, kind: input, shape index: {}]   ;;  %s136_s4 = inlined_call_operand.vmem [shape: f32[8,4], index: 4, kind: output, shape index: {}]  }
   0x1   :  { %81 = vset.pattern.permute.xlu0 %v88_v0  ;;  %v17_v1 = vld [vmem:[%s132_s0] sm:$0xff]  ;;  %83 = vset.pattern.permute.xlu1 %v89_v2  ;;  %v33_v5 = vlaneseq  ;;  %vm70_vm0 = vcmask 31744  }
   0x2   :  { %30 = vperm.xlu0 %81, %v17_v1   ;;  %50 = vperm.xlu1 %83, %v17_v1   ;;  %v18_v8 = vld [vmem:[%s133_s1] sm:$0xf] }
   0x3   :  { %v34_v6 = vshrl.u32 %v33_v5, 7  ;;  %v76_v11 = vld [vmem:[%s134_s2] ss:$0 sm:$0xff] }
   0x4   :  { %v20_v12 = vld [vmem:[%s135_s3] sm:$0xff] }
   0x5   :  { %v35_v7 = vsub.s32 0, %v34_v6  ;;  %v45_v10 = vsub.s32 1, %v34_v6  ;;  %v55_v14 = vsub.s32 2, %v34_v6  ;;  %v65_v16 = vsub.s32 3, %v34_v6 }
   0x6   :  { %82 = vset.pattern.permute.xlu0 %v90_v3  ;;  %84 = vset.pattern.permute.xlu1 %v91_v4  ;;  %v27_v17 = vadd.f32 %v76_v11, %v20_v12 }
   0x7   :  { %40 = vperm.xlu0 %82, %v17_v1   ;;  %60 = vperm.xlu1 %84, %v17_v1   ;;  %v36_v9 = vrot.slane %v18_v8, %v35_v7  ;;  %v46_v19 = vrot.slane %v18_v8, %v45_v10  ;;  %v56_v20 = vrot.slane %v18_v8, %v55_v14 }
   0x8   :  { %v66_v21 = vrot.slane %v18_v8, %v65_v16 }
   0xb   :  { %85 = vset.pattern.permute.xlu0 %v91_v4 }
  0x7d   :  { %v31_v13 = vpop.permute.xlu0 %30  ;;  %v51_v15 = vpop.permute.xlu1 %50 }
  0x7e   :  { %v37_v18 = vmul.f32 %v36_v9, %v31_v13  ;;  %v57_v26 = vmul.f32 %v56_v20, %v51_v15 }
  0x80   :  { %v38_v24 = vadd.f32 %v37_v18, %v27_v17 }
  0x82   :  { %v41_v22 = vpop.permute.xlu0 %40  ;;  %v61_v23 = vpop.permute.xlu1 %60 }
  0x83   :  { %v47_v25 = vmul.f32 %v46_v19, %v41_v22  ;;  %v67_v28 = vmul.f32 %v66_v21, %v61_v23 }
  0x85   :  { %v48_v27 = vadd.f32 %v47_v25, %v38_v24 }
  0x87   :  { %v58_v29 = vadd.f32 %v57_v26, %v48_v27 }
  0x89   :  { %v68_v30 = vadd.f32 %v67_v28, %v58_v29 }
  0x8b   :  { %86 = vtanh.f32 %v68_v30 }
  0x98   :  { %v87_v31 = vpop.eup %86 }
  0x99   :  { %71 = vst.msk [vmem:[%s136_s4] sm:$0xff] %vm70_vm0, %v87_v31 }

</bundles_post_ra>
